<compile_context>
chip_gen: v6e
topology: v6e:2x2x1
jax: 0.10.0
libtpu: 0.0.40
codegen_flags: <defaults>
</compile_context>

<pallas_src>
import jax
import jax.numpy as jnp
from jax.experimental import pallas as pl
from jax.experimental.pallas import tpu as pltpu

_LANES = 128
_TILE_ROWS = 4096   # 4096 x 128 f32 = 2 MiB per buffer (4 MiB double-buffered)
_ROW_ALIGN = 16     # multiple of 8 (f32) and 16 (bf16) sublane tiles


def _round_up(a, b):
    return ((a + b - 1) // b) * b


def _prox_kernel(alpha_ref, x_ref, o_ref):
    # alpha_ref: SMEM scalar (shape (1,)); x_ref/o_ref: (tile_r, 128) VMEM tiles.
    alpha = alpha_ref[0]
    x = x_ref[...].astype(jnp.float32)
    t = jnp.abs(x) - alpha                      # tau = 1
    # x / (1 + exp(-t)) == x * sigmoid(t).  sigmoid via tanh is a single EUP
    # transcendental per element (exp + reciprocal needs two, which can
    # co-bottleneck v7x's single EUP at full HBM rate) and is mathematically
    # identical: sigmoid(t) = 0.5 * tanh(0.5 * t) + 0.5.
    sig = 0.5 * jnp.tanh(0.5 * t) + 0.5
    o_ref[...] = (x * sig).astype(o_ref.dtype)


def prox_forward(x, alpha):
    """Elementwise prox forward.

    x: float32 or bfloat16 array of any shape.
    alpha: array of shape (1,) (the learned scalar).
    """
    orig_shape = x.shape
    total = x.size
    out_dtype = x.dtype

    alpha = jnp.asarray(alpha, dtype=jnp.float32).reshape(1)

    # Lane-dense slab: last dim = 128 lanes.  If the element count is already
    # a multiple of 128 this is a zero-copy reshape (no pad, no final slice).
    rem = total % _LANES
    if rem == 0:
        x2d = x.reshape(-1, _LANES)
    else:
        # TODO(synk): truly ragged element counts still pay one pad + one
        # slice pass; an in-kernel masked tail would avoid it.
        x2d = jnp.pad(x.reshape(-1), (0, _LANES - rem)).reshape(-1, _LANES)
    rows = x2d.shape[0]

    # Row tile: as large as possible (amortizes per-grid-step overhead), but
    # split mid-sized tensors into >= 2 blocks so the "parallel" grid axis can
    # shard across both TensorCores on v7x.  Trailing partial blocks are fine:
    # Pallas masks the out-of-bounds rows of the last tile.
    if rows <= _ROW_ALIGN:
        tile_r = rows  # full-extent block (always legal, tiny tensors)
    else:
        tile_r = max(_ROW_ALIGN,
                     min(_TILE_ROWS, _round_up(pl.cdiv(rows, 2), _ROW_ALIGN)))
    num_tiles = pl.cdiv(rows, tile_r)

    itemsize = jnp.dtype(out_dtype).itemsize
    out2d = pl.pallas_call(
        _prox_kernel,
        out_shape=jax.ShapeDtypeStruct((rows, _LANES), out_dtype),
        grid=(num_tiles,),
        in_specs=[
            pl.BlockSpec(memory_space=pltpu.SMEM),             # alpha scalar
            pl.BlockSpec((tile_r, _LANES), lambda i: (i, 0)),  # x tile
        ],
        out_specs=pl.BlockSpec((tile_r, _LANES), lambda i: (i, 0)),
        compiler_params=pltpu.CompilerParams(
            dimension_semantics=("parallel",),
            # Well above actual use (~8 MiB); lifts v5e's 16 MiB default and is
            # far below physical VMEM on every generation.
            vmem_limit_bytes=32 << 20,
        ),
        cost_estimate=pl.CostEstimate(
            flops=4 * total,
            transcendentals=total,               # one tanh per element
            bytes_accessed=2 * itemsize * total,  # read + write per element
        ),
    )(alpha, x2d)

    out_flat = out2d.reshape(-1)
    if rem != 0:
        out_flat = out_flat[:total]
    return out_flat.reshape(orig_shape)


def _reference(x, alpha):
    return x / (1.0 + jnp.exp(-(jnp.abs(x) - alpha[0])))


if __name__ == "__main__":
    key = jax.random.PRNGKey(0)
    k_x, k_alpha, k_x2 = jax.random.split(key, 3)

    # Deterministic parameter init matching nn.init.uniform_(alpha, b=1e-05)
    alpha = jax.random.uniform(k_alpha, (1,), dtype=jnp.float32,
                               minval=0.0, maxval=1e-05)

    # Small NCHW input consistent with a conv-style module.
    x = jax.random.normal(k_x, (2, 4, 16, 16), dtype=jnp.float32)

    out = jax.block_until_ready(prox_forward(x, alpha))
    ref = _reference(x, alpha)
    assert out.shape == x.shape and out.dtype == x.dtype
    assert jnp.allclose(out, ref, atol=1e-6, rtol=1e-5)

    # Ragged element count (not a multiple of 128) exercises the pad path.
    x_ragged = jax.random.normal(k_x2, (1, 3, 5, 7), dtype=jnp.float32)
    out_ragged = jax.block_until_ready(prox_forward(x_ragged, alpha))
    assert out_ragged.shape == x_ragged.shape
    assert jnp.allclose(out_ragged, _reference(x_ragged, alpha),
                        atol=1e-6, rtol=1e-5)

    # bf16 I/O path (halves HBM traffic); compute stays f32 in-kernel.
    x_bf16 = x.astype(jnp.bfloat16)
    out_bf16 = jax.block_until_ready(prox_forward(x_bf16, alpha))
    assert out_bf16.dtype == jnp.bfloat16
    assert jnp.allclose(out_bf16.astype(jnp.float32),
                        _reference(x_bf16.astype(jnp.float32), alpha),
                        atol=2e-2, rtol=2e-2)

    print("KERNEL_OK")
</pallas_src>

<mosaic_0001>
module attributes {stable_mosaic.version = 11 : i64} {
  func.func @_prox_kernel(%arg0: i32, %arg1: memref<1xf32, #tpu.memory_space<smem>>, %arg2: memref<16x128xf32, #tpu.memory_space<vmem>>, %arg3: memref<16x128xf32, #tpu.memory_space<vmem>>) attributes {dimension_semantics = [#tpu.dimension_semantics<parallel>], iteration_bounds = array<i64: 1>, scalar_prefetch = 0 : i64, scratch_operands = 0 : i64, tpu.core_type = #tpu.core_type<tc>, window_params = [{transform_indices = @transform_0, window_bounds = array<i64: 1>}, {transform_indices = @transform_1, window_bounds = array<i64: 16, 128>}, {transform_indices = @transform_2, window_bounds = array<i64: 16, 128>}]} {
    %c0 = arith.constant 0 : index
    %0 = memref.load %arg1[%c0] : memref<1xf32, #tpu.memory_space<smem>>
    %c0_0 = arith.constant 0 : index
    %c0_1 = arith.constant 0 : index
    %1 = vector.load %arg2[%c0_0, %c0_1] : memref<16x128xf32, #tpu.memory_space<vmem>>, vector<16x128xf32>
    %2 = math.absf %1 : vector<16x128xf32>
    %3 = vector.broadcast %0 : f32 to vector<16x128xf32>
    %4 = arith.subf %2, %3 : vector<16x128xf32>
    %cst = arith.constant 5.000000e-01 : f32
    %5 = vector.broadcast %cst : f32 to vector<16x128xf32>
    %6 = arith.mulf %5, %4 : vector<16x128xf32>
    %7 = math.tanh %6 : vector<16x128xf32>
    %cst_2 = arith.constant 5.000000e-01 : f32
    %8 = vector.broadcast %cst_2 : f32 to vector<16x128xf32>
    %9 = arith.mulf %8, %7 : vector<16x128xf32>
    %cst_3 = arith.constant 5.000000e-01 : f32
    %10 = vector.broadcast %cst_3 : f32 to vector<16x128xf32>
    %11 = arith.addf %9, %10 : vector<16x128xf32>
    %12 = arith.mulf %1, %11 : vector<16x128xf32>
    %c0_4 = arith.constant 0 : index
    %c0_5 = arith.constant 0 : index
    %13 = vector.load %arg3[%c0_4, %c0_5] : memref<16x128xf32, #tpu.memory_space<vmem>>, vector<16x128xf32>
    tpu.vector_store %arg3[%c0_4, %c0_5], %12 {strides = array<i32>} : memref<16x128xf32, #tpu.memory_space<vmem>>, vector<16x128xf32>,
    return
  }
  func.func @transform_0(%arg0: i32) -> i32 {
    %c0_i32 = arith.constant 0 : i32
    %c0_i32_0 = arith.constant 0 : i32
    return %c0_i32 : i32
  }
  func.func @transform_1(%arg0: i32) -> (i32, i32) {
    %c0_i32 = arith.constant 0 : i32
    %c0_i32_0 = arith.constant 0 : i32
    return %arg0, %c0_i32 : i32, i32
  }
  func.func @transform_2(%arg0: i32) -> (i32, i32) {
    %c0_i32 = arith.constant 0 : i32
    %c0_i32_0 = arith.constant 0 : i32
    return %arg0, %c0_i32 : i32, i32
  }
}

</mosaic_0001>

<bundles_post_ra>
// kernel: tpu_custom_call.1
= control target key start
LH: loop header
LB: loop body
LE: loop exit
PB: predicated region body
PF: predicated region fallthrough
CT: control target
= control target key end

     0   :  { %8 = vsyncpa [#allocation4], 0  ;;  %s150_s0 = inlined_call_operand.<no memory space> [shape: f32[1], index: 0, kind: input, shape index: {}]   ;;  %s151_s1 = inlined_call_operand.hbm [shape: f32[16,128], index: 1, kind: input, shape index: {}]   ;;  %s152_s2 = inlined_call_operand.hbm [shape: f32[16,128], index: 2, kind: output, shape index: {}]  }
   0x1   :  { %9 = vsyncpa [#allocation5], 0  ;;  %s116_s9 = smov [#allocation3]  }
   0x2   :  { %s17_s10 = sshll.u32 %s116_s9, 4  ;;  %s18_s10 = int_to_ptr.vmem [resolvable:$true] %s17_s10 }
   0x3   :  { %s80_s11 = scalar_lea.vmem %s18_s10, 256  ;;  %p85_p1 = scmp.lt.s32.totalorder %s18_s10, %s18_s10 }
   0x4   :  { %p81_p0 = scmp.ne.s32.totalorder %s18_s10, %s80_s11  ;;  %p86_p2 = scmp.lt.s32.totalorder %s80_s11, %s80_s11 }
   0x6   :  { %p87_p3 = por %p86_p2, %p85_p1 }
   0x8   :  { %p88_p4 = pnand %p87_p3, %p81_p0 }
   0xa   :  { %91 = shalt.err (!%p88_p4)
}
   0xb   :  { %s117_s12 = smov 128   ;;  %s118_s13 = smov 8  }
   0xc   :  { %23 = dma.hbm_to_vmem [thread:$0]  %s151_s1, 256, %s18_s10, [#allocation4], %s117_s12, %s117_s12, %s118_s13  }
   0xd   :  { %112 = dma.done.wait [#allocation4], 256  }
   0xe   :  { %113 = vsyncadd [#allocation4], 4294967040  ;;  %v28_v0 = vld [vmem:[#allocation3] sm:$0xff]  ;;  %v32_v1 = vstv %s150_s0  ;;  %v29_v2 = vld [vmem:[#allocation3 + $0x8] sm:$0xff]  ;;  %s119_s1 = smov [#allocation6]  }
   0xf   :  { %v30_v3 = vand.u32 2147483647, %v28_v0  ;;  %v31_v4 = vand.u32 2147483647, %v29_v2  ;;  %s52_s18 = sshll.u32 %s119_s1, 4  ;;  %s53_s18 = int_to_ptr.vmem [resolvable:$true] %s52_s18 }
  0x10   :  { %s92_s0 = scalar_lea.vmem %s53_s18, 256  ;;  %p97_p6 = scmp.lt.s32.totalorder %s53_s18, %s53_s18 }
  0x11   :  { %v33_v5 = vsub.f32 %v30_v3, %v32_v1  ;;  %v34_v6 = vsub.f32 %v31_v4, %v32_v1  ;;  %p93_p5 = scmp.ne.s32.totalorder %s53_s18, %s92_s0  ;;  %p98_p7 = scmp.lt.s32.totalorder %s92_s0, %s92_s0 }
  0x13   :  { %v35_v7 = vmul.f32 0.5, %v33_v5  ;;  %v36_v8 = vmul.f32 0.5, %v34_v6  ;;  %p99_p8 = por %p98_p7, %p97_p6 }
  0x15   :  { %68 = vtanh.f32 %v35_v7  ;;  %p100_p9 = pnand %p99_p8, %p93_p5 }
  0x16   :  { %70 = vtanh.f32 %v36_v8 }
  0x22   :  { %v69_v9 = vpop.eup %68 }
  0x23   :  { %v71_v10 = vpop.eup %70  ;;  %v39_v11 = vmul.f32 0.5, %v69_v9 }
  0x24   :  { %v40_v12 = vmul.f32 0.5, %v71_v10 }
  0x25   :  { %v41_v13 = vadd.f32 0.5, %v39_v11 }
  0x26   :  { %v42_v14 = vadd.f32 0.5, %v40_v12 }
  0x27   :  { %v43_v15 = vmul.f32 %v41_v13, %v28_v0 }
  0x28   :  { %v44_v16 = vmul.f32 %v42_v14, %v29_v2 }
  0x29   :  { %45 = vst [vmem:[#allocation6] sm:$0xff] %v43_v15 }
  0x2a   :  { %46 = vst [vmem:[#allocation6 + $0x8] sm:$0xff] %v44_v16 }
  0x2b   :  { %103 = shalt.err (!%p100_p9)
}
  0x2c   :  { %58 = dma.vmem_to_hbm [thread:$0]  %s53_s18, 256, %s152_s2, [#allocation5], %s117_s12, %s117_s12, %s118_s13  }
  0x2d   :  { %114 = dma.done.wait [#allocation5], 256  }
  0x2e   :  { %115 = vsyncadd [#allocation5], 4294967040 }
  0x2f   :  { %62 = vsyncpa [#allocation4], 1 }
  0x30   :  { %63 = vsyncpa [#allocation5], 1 }

</bundles_post_ra>
